<compile_context>
chip_gen: v7x
topology: tpu7x:2x2x1
jax: 0.10.0
libtpu: 0.0.40
codegen_flags: <defaults>
</compile_context>

<pallas_src>
import math

import jax
import jax.numpy as jnp
from jax.experimental import pallas as pl
from jax.experimental.pallas import tpu as pltpu


def _round_up(x, m):
    return ((x + m - 1) // m) * m


def _footprint_bytes(tm, tn, tk):
    """Approximate double-buffered VMEM footprint of one pipeline stage."""
    x_b = 2 * tm * tk * 4                      # activations block, f32 (cast in-kernel)
    w_b = 2 * tk * tn * 2                      # weight block, bf16
    b_b = 2 * 8 * _round_up(tn, 128) * 4       # bias block (sublane/lane padded)
    r_b = 2 * tm * tn * 4                      # residual block, f32
    o_b = 2 * tm * tn * 4                      # output / accumulator block, f32
    return x_b + w_b + b_b + r_b + o_b


def _vmem_capacity_bytes():
    try:
        cap = getattr(pltpu.get_tpu_info(), "vmem_capacity_bytes", None)
        if cap:
            return int(cap)
    except Exception:
        pass
    return 64 * 1024 * 1024   # conservative: v7x per-TensorCore VMEM


def _pick_tiles(M, N, H, budget):
    # Row tiles: prefer large (MXU fill / amortize per-step overhead).
    if M >= 1024:
        tm_cands = [512, 256, 128, 64, 32, 16, 8]
    elif M >= 256:
        tm_cands = [256, 128, 64, 32, 16, 8]
    else:
        tm_cands = [max(8, _round_up(M, 8))]

    # Output-column tiles: prefer full N (weight fully VMEM-resident), then the
    # largest multiple-of-256 divisor of N, then multiple-of-128, else N.
    tn_cands = [N]
    tn_cands += sorted({d for d in range(256, min(N, 2048) + 1, 256) if N % d == 0},
                       reverse=True)
    tn_cands += sorted({d for d in range(128, min(N, 2048) + 1, 128) if N % d == 0},
                       reverse=True)
    seen, tn_list = set(), []
    for t in tn_cands:
        if t not in seen:
            seen.add(t)
            tn_list.append(t)

    # Reduction tiles: prefer the whole H (no K split); split only if needed.
    tk_cands = [H] + sorted({d for d in (4096, 2048, 1024, 512, 256, 128)
                             if d < H and H % d == 0}, reverse=True)

    for tk in tk_cands:              # prefer no K split
        for tn in tn_list:           # prefer large / resident output tiles
            for tm in tm_cands:      # prefer large row tiles
                if _footprint_bytes(tm, tn, tk) <= budget:
                    return tm, tn, tk
    # Pathological shapes: smallest tiles, vmem limit is raised best-effort.
    return tm_cands[-1], tn_list[-1], tk_cands[-1]


def _self_output_kernel(x_ref, w_ref, b_ref, res_ref, o_ref):
    # x_ref:   [tm, tk] f32 activations (bf16-cast in-kernel; saves an HBM pass)
    # w_ref:   [tk, tn] bf16 weight, already transposed to (in, out) layout
    # b_ref:   [1,  tn] f32 bias
    # res_ref: [tm, tn] residual (input_tensor)
    # o_ref:   [tm, tn] f32 output; doubles as the K-axis accumulator
    k = pl.program_id(2)

    @pl.when(k == 0)
    def _init():
        # nn.Dropout is the identity at inference time.
        o_ref[...] = res_ref[...].astype(jnp.float32) + b_ref[...]

    o_ref[...] += jnp.dot(
        x_ref[...].astype(jnp.bfloat16),
        w_ref[...],
        preferred_element_type=jnp.float32,
    )


def lm_base_self_output(hidden_states, input_tensor, weight, bias, *,
                        dropout_prob=0.0, training=False):
    """hidden_states, input_tensor: [B, S, H]; weight: [N, H] (PyTorch (out, in));
    bias: [N].  Returns [B, S, N] (eval-mode dropout)."""
    if training and dropout_prob > 0.0:
        # TODO(synk): training-mode dropout (pltpu.prng_seed + stateful_bernoulli)
        raise NotImplementedError("training-mode dropout is not implemented")

    B, S, H = hidden_states.shape
    N = weight.shape[0]
    M = B * S
    out_dtype = hidden_states.dtype

    vmem_cap = _vmem_capacity_bytes()
    budget = int(vmem_cap * 0.55)
    tm, tn, tk = _pick_tiles(M, N, H, budget)

    Mt = -(-M // tm)
    Nt = -(-N // tn)
    Kt = -(-H // tk)

    # v7x has 2 TensorCores sharded over "parallel" axes: avoid a 1x1 grid.
    if Mt == 1 and Nt == 1 and M >= 16:
        tm = max(8, _round_up(-(-M // 2), 8))
        Mt = -(-M // tm)

    footprint = _footprint_bytes(tm, tn, tk)
    vmem_limit = int(footprint * 1.3) + (4 << 20)
    vmem_limit = max(vmem_limit, 32 << 20)
    vmem_limit = min(vmem_limit, vmem_cap - (8 << 20))
    vmem_limit = max(vmem_limit, footprint + (2 << 20))

    # Grid order: put the block index of the operand that is more expensive to
    # re-stream on the SLOW axis, so Pallas skips its re-DMA across the inner
    # sweep. (With Nt == 1 the weight is resident regardless of order.)
    w_stream = N * H * 2      # bytes per full pass over the bf16 weight
    x_stream = M * H * 4      # bytes per full pass over the f32 activations
    rows_outer = w_stream * (Mt - 1) <= x_stream * (Nt - 1)

    if rows_outer:
        grid = (Mt, Nt, Kt)
        x_map = lambda i, j, k: (i, k)
        w_map = lambda i, j, k: (k, j)
        b_map = lambda i, j, k: (0, j)
        r_map = lambda i, j, k: (i, j)
    else:
        grid = (Nt, Mt, Kt)
        x_map = lambda j, i, k: (i, k)
        w_map = lambda j, i, k: (k, j)
        b_map = lambda j, i, k: (0, j)
        r_map = lambda j, i, k: (i, j)
    o_map = r_map

    x2d = hidden_states.reshape(M, H)
    r2d = input_tensor.reshape(M, N)
    # One-time transpose + cast of the weight to (in, out) bf16: guarantees a
    # plain MXU matmul in the kernel (no per-step XLU transpose), amortized
    # across all row tiles.
    w_t = weight.T.astype(jnp.bfloat16)
    b2d = bias.reshape(1, N).astype(jnp.float32)

    out = pl.pallas_call(
        _self_output_kernel,
        out_shape=jax.ShapeDtypeStruct((M, N), jnp.float32),
        grid_spec=pltpu.PrefetchScalarGridSpec(
            num_scalar_prefetch=0,
            grid=grid,
            in_specs=[
                pl.BlockSpec((tm, tk), x_map),   # activations (f32)
                pl.BlockSpec((tk, tn), w_map),   # weight (bf16, (in,out))
                pl.BlockSpec((1, tn), b_map),    # bias
                pl.BlockSpec((tm, tn), r_map),   # residual
            ],
            out_specs=pl.BlockSpec((tm, tn), o_map),
        ),
        compiler_params=pltpu.CompilerParams(
            dimension_semantics=("parallel", "parallel", "arbitrary"),
            vmem_limit_bytes=vmem_limit,
        ),
    )(x2d, w_t, b2d, r2d)

    out = out.reshape(B, S, N)
    if out.dtype != out_dtype:
        out = out.astype(out_dtype)
    return out


def _reference(hidden_states, input_tensor, weight, bias):
    return hidden_states @ weight.T + bias + input_tensor


if __name__ == "__main__":
    # Small synthetic config consistent with the module: batch=2, seq=8, hidden=32.
    B, S, H = 2, 8, 32

    key = jax.random.PRNGKey(0)
    k_h, k_in, k_w, k_b = jax.random.split(key, 4)

    hidden_states = jax.random.normal(k_h, (B, S, H), dtype=jnp.float32)
    input_tensor = jax.random.normal(k_in, (B, S, H), dtype=jnp.float32)

    # nn.Linear-style init (weight is (out, in), like PyTorch).
    lim = 1.0 / math.sqrt(H)
    weight = jax.random.uniform(k_w, (H, H), minval=-lim, maxval=lim,
                                dtype=jnp.float32)
    bias = jax.random.uniform(k_b, (H,), minval=-lim, maxval=lim,
                              dtype=jnp.float32)

    out = lm_base_self_output(hidden_states, input_tensor, weight, bias,
                              dropout_prob=0.1, training=False)
    jax.block_until_ready(out)

    ref = _reference(hidden_states, input_tensor, weight, bias)
    assert out.shape == (B, S, H)
    # bf16 matmul operands with f32 accumulation -> loosened tolerance.
    assert jnp.allclose(out, ref, atol=2e-2, rtol=2e-2), "mismatch vs reference"

    print("KERNEL_OK")
</pallas_src>

<mosaic_0001>
module attributes {stable_mosaic.version = 11 : i64} {
  func.func @_self_output_kernel(%arg0: i32, %arg1: i32, %arg2: i32, %arg3: memref<8x32xf32, #tpu.memory_space<vmem>>, %arg4: memref<32x32xbf16, #tpu.memory_space<vmem>>, %arg5: memref<1x32xf32, #tpu.memory_space<vmem>>, %arg6: memref<8x32xf32, #tpu.memory_space<vmem>>, %arg7: memref<8x32xf32, #tpu.memory_space<vmem>>) attributes {dimension_semantics = [#tpu.dimension_semantics<parallel>, #tpu.dimension_semantics<parallel>, #tpu.dimension_semantics<arbitrary>], iteration_bounds = array<i64: 1, 2, 1>, scalar_prefetch = 0 : i64, scratch_operands = 0 : i64, tpu.core_type = #tpu.core_type<tc>, window_params = [{transform_indices = @transform_0, window_bounds = array<i64: 8, 32>}, {transform_indices = @transform_1, window_bounds = array<i64: 32, 32>}, {transform_indices = @transform_2, window_bounds = array<i64: 1, 32>}, {transform_indices = @transform_3, window_bounds = array<i64: 8, 32>}, {transform_indices = @transform_4, window_bounds = array<i64: 8, 32>}]} {
    %c0_i32 = arith.constant 0 : i32
    %0 = arith.cmpi eq, %arg2, %c0_i32 : i32
    %1 = arith.extui %0 : i1 to i32
    %c0_i32_0 = arith.constant 0 : i32
    %2 = arith.cmpi ne, %1, %c0_i32_0 : i32
    scf.if %2 {
      %c0_8 = arith.constant 0 : index
      %c0_9 = arith.constant 0 : index
      %10 = vector.load %arg6[%c0_8, %c0_9] : memref<8x32xf32, #tpu.memory_space<vmem>>, vector<8x32xf32>
      %c0_10 = arith.constant 0 : index
      %c0_11 = arith.constant 0 : index
      %11 = vector.load %arg5[%c0_10, %c0_11] : memref<1x32xf32, #tpu.memory_space<vmem>>, vector<1x32xf32>
      %12 = vector.broadcast %11 : vector<1x32xf32> to vector<8x32xf32>
      %13 = arith.addf %10, %12 : vector<8x32xf32>
      %c0_12 = arith.constant 0 : index
      %c0_13 = arith.constant 0 : index
      %14 = vector.load %arg7[%c0_12, %c0_13] : memref<8x32xf32, #tpu.memory_space<vmem>>, vector<8x32xf32>
      tpu.vector_store %arg7[%c0_12, %c0_13], %13 {strides = array<i32>} : memref<8x32xf32, #tpu.memory_space<vmem>>, vector<8x32xf32>,
    } else {
    }
    %c0 = arith.constant 0 : index
    %c0_1 = arith.constant 0 : index
    %3 = vector.load %arg7[%c0, %c0_1] : memref<8x32xf32, #tpu.memory_space<vmem>>, vector<8x32xf32>
    %c0_2 = arith.constant 0 : index
    %c0_3 = arith.constant 0 : index
    %4 = vector.load %arg3[%c0_2, %c0_3] : memref<8x32xf32, #tpu.memory_space<vmem>>, vector<8x32xf32>
    %5 = arith.truncf %4 : vector<8x32xf32> to vector<8x32xbf16>
    %c0_4 = arith.constant 0 : index
    %c0_5 = arith.constant 0 : index
    %6 = vector.load %arg4[%c0_4, %c0_5] : memref<32x32xbf16, #tpu.memory_space<vmem>>, vector<32x32xbf16>
    %cst = arith.constant dense<0.000000e+00> : vector<8x32xf32>
    %7 = tpu.matmul %5, %6, %cst {dimension_numbers = #tpu.dot_dimension_numbers<[1], [0], [0], [1], [0, 0, 1, 1], [], []>} : vector<8x32xbf16>, vector<32x32xbf16>, vector<8x32xf32> -> vector<8x32xf32>
    %8 = arith.addf %3, %7 : vector<8x32xf32>
    %c0_6 = arith.constant 0 : index
    %c0_7 = arith.constant 0 : index
    %9 = vector.load %arg7[%c0_6, %c0_7] : memref<8x32xf32, #tpu.memory_space<vmem>>, vector<8x32xf32>
    tpu.vector_store %arg7[%c0_6, %c0_7], %8 {strides = array<i32>} : memref<8x32xf32, #tpu.memory_space<vmem>>, vector<8x32xf32>,
    return
  }
  func.func @transform_0(%arg0: i32, %arg1: i32, %arg2: i32) -> (i32, i32) {
    %c0_i32 = arith.constant 0 : i32
    return %arg1, %arg2 : i32, i32
  }
  func.func @transform_1(%arg0: i32, %arg1: i32, %arg2: i32) -> (i32, i32) {
    %c0_i32 = arith.constant 0 : i32
    return %arg2, %arg0 : i32, i32
  }
  func.func @transform_2(%arg0: i32, %arg1: i32, %arg2: i32) -> (i32, i32) {
    %c0_i32 = arith.constant 0 : i32
    %c0_i32_0 = arith.constant 0 : i32
    return %c0_i32, %arg0 : i32, i32
  }
  func.func @transform_3(%arg0: i32, %arg1: i32, %arg2: i32) -> (i32, i32) {
    %c0_i32 = arith.constant 0 : i32
    return %arg1, %arg0 : i32, i32
  }
  func.func @transform_4(%arg0: i32, %arg1: i32, %arg2: i32) -> (i32, i32) {
    %c0_i32 = arith.constant 0 : i32
    return %arg1, %arg0 : i32, i32
  }
}

</mosaic_0001>

<bundles_post_ra>
// kernel: tpu_custom_call.1
= control target key start
LH: loop header
LB: loop body
LE: loop exit
PB: predicated region body
PF: predicated region fallthrough
CT: control target
= control target key end

     0   :  { %s1131_s0 = inlined_call_operand.hbm [shape: f32[16,32], index: 0, kind: input, shape index: {}]   ;;  %s1132_s1 = inlined_call_operand.hbm [shape: bf16[32,32], index: 1, kind: input, shape index: {}]   ;;  %s1133_s2 = inlined_call_operand.vmem [shape: f32[1,32], index: 2, kind: input, shape index: {}]   ;;  %s1134_s3 = inlined_call_operand.hbm [shape: f32[16,32], index: 3, kind: input, shape index: {}]   ;;  %s1135_s4 = inlined_call_operand.hbm [shape: f32[16,32], index: 4, kind: output, shape index: {}]  }
   0x1   :  { %1141 = sst [smem:[#allocation13_spill]] %s1131_s0 }
   0x2   :  { %1142 = sst [smem:[#allocation14_spill]] %s1134_s3 }
   0x3   :  { %9 = vsyncpa [#allocation3], 0 }
   0x4   :  { %11 = vsyncpa [#allocation3 + $0x1], 0 }
   0x5   :  { %12 = vsyncpa [#allocation6], 0 }
   0x6   :  { %13 = vsyncpa [#allocation4], 0 }
   0x7   :  { %15 = vsyncpa [#allocation4 + $0x1], 0  ;;  %s872_s15 = smov 0   ;;  %s874_s16 = smov 0  }
   0x8   :  { %s876_s17 = smov 0   ;;  %s878_s18 = smov 0  }
   0x9   :  { %s880_s19 = smov 0   ;;  %s882_s20 = smov 0  }
   0xa LB: > { %s36_s21 = sadd.s32 1, %s833_s19  ;;  %s49_s22 = sadd.s32 1, %s825_s17  ;;  %s837_s20 = sphi %s882_s20, %s21_s20   ;;  %s833_s19 = sphi %s880_s19, %s1163_s19   ;;  %s829_s18 = sphi %s878_s18, %s1162_s18   ;;  %s825_s17 = sphi %s876_s17, %s1161_s17   ;;  %s821_s16 = sphi %s874_s16, %s1160_s16   ;;  %s817_s15 = sphi %s872_s15, %s1159_s15  }
   0xb   : > { %p38_p0 = scmp.ge.s32.totalorder %s36_s21, 2  ;;  %p56_p1 = scmp.ne.s32.totalorder %s825_s17, %s821_s16 }
   0xc   : > { %p57_p2 = scmp.eq.s32.totalorder %s837_s20, 0  ;;  %p601_p5 = scmp.lt.s32.totalorder %s837_s20, 2 }
   0xd   : > { %s1165_s21 = smov (%p38_p0, %s36_s21), 0  ;;  %s219_s24 = sand.u32 1, %s837_s20  }
   0xe   : > { %p58_p4 = por %p57_p2, %p56_p1  ;;  %s44_s23 = ssub.s32 %s833_s19, %s1165_s21 }
   0xf   : > { %p47_p6 = scmp.eq.s32.totalorder %s44_s23, 0  ;;  %s221_s25 = sand.u32 1, %s825_s17  }
  0x10   : > { %s548_s26 = sshll.u32 %s833_s19, 7  ;;  %s922_s28 = sshll.u32 %s221_s25, 3 }
  0x11   : > { %s920_s27 = scalar_select %p47_p6, %s825_s17, %s49_s22  }
  0x12   : > { %s1143_s0 = sld [smem:[#allocation13_spill]]  ;;  %p931_p7 = pnand %p601_p5, %p58_p4 }
  0x13   : > { %s223_s7 = scalar_lea.vmem [#allocation2], %s922_s28  ;;  %s938_s9 = scalar_lea.sflag [#allocation3], %s219_s24 }
  0x14   : > { %s231_s8 = sshll.u32 %s223_s7, 4  ;;  %p661_p9 = pneg %p931_p7  ;;  %s936_s8 = int_to_ptr.vmem [resolvable:$true] %s231_s8 }
  0x18   : > { %s929_s5 = scalar_lea.hbm %s1143_s0, %s548_s26  ;;  %s664_s13 = scalar_lea.hbm %s1143_s0, 256 }
  0x19   : > { %s659_s10 = scalar_lea.hbm %s929_s5, 128  ;;  %p665_p12 = scmp.lt.u32.totalorder %s929_s5, %s1143_s0 }
  0x1a   : > { %p660_p8 = scmp.ne.s32.totalorder %s929_s5, %s659_s10  ;;  %p666_p13 = scmp.lt.u32.totalorder %s664_s13, %s659_s10 }
  0x1b   : > { %p668_p2 = scmp.lt.u32.totalorder %s659_s10, %s929_s5 }
  0x1c   : > { %p662_p10 = pnand %p661_p9, %p660_p8  ;;  %p667_p0 = por %p666_p13, %p665_p12 }
  0x1e   : > { %p663_p11 = pneg %p662_p10  ;;  %p669_p4 = por %p668_p2, %p667_p0 }
  0x20   : > { %p670_p5 = pnand %p669_p4, %p663_p11 }
  0x22   : > { %673 = shalt.err (!%p670_p5)
}
  0x23   : > { %s674_s23 = scalar_lea.vmem %s936_s8, 128  ;;  %s839_s24 = smov [#allocation2]  }
  0x24   : > { %p675_p6 = scmp.ne.s32.totalorder %s936_s8, %s674_s23  ;;  %s679_s25 = sshll.u32 %s839_s24, 4  ;;  %s680_s25 = int_to_ptr.vmem [resolvable:$false] %s679_s25 }
  0x25   : > { %s681_s29 = scalar_lea.vmem %s680_s25, 256  ;;  %p682_p3 = scmp.lt.s32.totalorder %s936_s8, %s680_s25 }
  0x26   : > { %p677_p8 = pnand %p675_p6, %p661_p9  ;;  %p683_p12 = scmp.lt.s32.totalorder %s681_s29, %s674_s23 }
  0x28   : > { %p678_p10 = pneg %p677_p8  ;;  %p684_p13 = por %p683_p12, %p682_p3 }
  0x2a   : > { %p685_p0 = pnand %p684_p13, %p678_p10 }
  0x2c   : > { %688 = shalt.err (!%p685_p0)
}
  0x2d   : > { %592 = dma.hbm_to_vmem [thread:$0]  (!%p931_p7), %s929_s5, 128, %s936_s8, %s938_s9  }
  0x2e   : > { %s967_s30 = sadd.s32 4294967295, %s837_s20   ;;  %s542_s7 = sadd.s32 4294967294, %s837_s20  }
  0x2f   : > { %p62_p3 = scmp.ne.s32.totalorder %s821_s16, %s817_s15  ;;  %p1136_p11 = scmp.eq.s32.totalorder %s967_s30, 0 }
  0x30   : > { %p170_p2 = scmp.eq.s32.totalorder %s967_s30, 1  ;;  %p176_p4 = scmp.eq.s32.totalorder %s542_s7, 1 }
  0x31   : > { %p543_p5 = scmp.ge.s32.totalorder %s837_s20, 1  ;;  %p977_p6 = por %p1136_p11, %p62_p3 }
  0x32   : > { %p984_p8 = por %p170_p2, %p56_p1  ;;  %p988_p10 = por %p176_p4, %p62_p3 }
  0x33   : > { %s1145_s10 = scalar_select %p977_p6, 1, 0 }
  0x34   : > { %s1146_s5 = scalar_select %p984_p8, 1, 0 }
  0x35   : > { %s1147_s8 = scalar_select %p988_p10, 1, 0 }
  0x36   : > { %p183_p12 = scmp.lt.s32.totalorder %s837_s20, 3  ;;  %s840_s12 = smov [#allocation5]  }
  0x37   : > { %s199_s13 = sshll.u32 %s840_s12, 4  ;;  %s1149_s3 = sld [smem:[#allocation14_spill]]  ;;  %s1004_s13 = int_to_ptr.vmem [resolvable:$true] %s199_s13 }
  0x38   : > { %p993_p13 = pnand %p543_p5, %p183_p12  ;;  %s242_s24 = scalar_lea.vmem [#allocation7], %s922_s28 }
  0x39   : > { %s250_s25 = sshll.u32 %s242_s24, 4  ;;  %s251_s25 = int_to_ptr.vmem [resolvable:$true] %s250_s25 }
  0x3a   : > { %s1148_s11 = scalar_select %p993_p13, 1, 0 }
  0x3b   : > { %p585_p1 = pneg %p993_p13 }
  0x3d   : > { %s1002_s23 = scalar_lea.hbm %s1149_s3, %s548_s26  ;;  %p1011_p0 = pnand %p585_p1, %p1136_p11 }
  0x3e   : > { %s689_s7 = scalar_lea.hbm %s1002_s23, 128  ;;  %s694_s14 = scalar_lea.hbm %s1149_s3, 256 }
  0x3f   : > { %s1150_s29 = scalar_select %p1011_p0, 1, 0 }
  0x40   : > { %p690_p3 = scmp.ne.s32.totalorder %s1002_s23, %s689_s7  ;;  %p695_p5 = scmp.lt.u32.totalorder %s1002_s23, %s1149_s3 }
  0x41   : > { %p696_p12 = scmp.lt.u32.totalorder %s694_s14, %s689_s7  ;;  %p698_p11 = scmp.lt.u32.totalorder %s689_s7, %s1002_s23 }
  0x42   : > { %p692_p2 = pnand %p690_p3, %p661_p9 }
  0x43   : > { %p697_p1 = por %p696_p12, %p695_p5 }
  0x44   : > { %p693_p4 = pneg %p692_p2 }
  0x45   : > { %p699_p10 = por %p698_p11, %p697_p1 }
  0x47   : > { %p700_p8 = pnand %p699_p10, %p693_p4 }
  0x49   : > { %703 = shalt.err (!%p700_p8)
}
  0x4a   : > { %s704_s28 = scalar_lea.vmem %s251_s25, 128  ;;  %s841_s24 = smov [#allocation7]  }
  0x4b   : > { %p705_p6 = scmp.ne.s32.totalorder %s251_s25, %s704_s28  ;;  %s709_s26 = sshll.u32 %s841_s24, 4  ;;  %s710_s26 = int_to_ptr.vmem [resolvable:$false] %s709_s26 }
  0x4c   : > { %s711_s12 = scalar_lea.vmem %s710_s26, 256  ;;  %p712_p13 = scmp.lt.s32.totalorder %s251_s25, %s710_s26 }
  0x4d   : > { %p707_p3 = pnand %p705_p6, %p661_p9  ;;  %p713_p0 = scmp.lt.s32.totalorder %s711_s12, %s704_s28 }
  0x4f   : > { %p708_p2 = pneg %p707_p3  ;;  %p714_p5 = por %p713_p0, %p712_p13 }
  0x51   : > { %p715_p12 = pnand %p714_p5, %p708_p2 }
  0x53   : > { %718 = shalt.err (!%p715_p12)
}
  0x54   : > { %595 = dma.hbm_to_vmem [thread:$0]  (!%p931_p7), %s1002_s23, 128, %s251_s25, %s938_s9  }
  0x55   : > { %s719_s14 = scalar_lea.hbm %s1132_s1, 256  ;;  %p1151_p11 = scmp.ne.s32.totalorder %s1150_s29, 0 }
  0x56   : > { %p720_p9 = scmp.ne.s32.totalorder %s1132_s1, %s719_s14  ;;  %p726_p13 = scmp.lt.u32.totalorder %s719_s14, %s1132_s1 }
  0x57   : > { %p721_p6 = pneg %p1151_p11 }
  0x59   : > { %p722_p8 = pnand %p721_p6, %p720_p9 }
  0x5b   : > { %p723_p10 = pneg %p722_p8 }
  0x5d   : > { %p728_p0 = pnand %p726_p13, %p723_p10 }
  0x5f   : > { %731 = shalt.err (!%p728_p0)
}
  0x60   : > { %s732_s6 = scalar_lea.vmem %s1004_s13, 256  ;;  %p740_p3 = scmp.lt.s32.totalorder %s1004_s13, %s1004_s13 }
  0x61   : > { %p733_p7 = scmp.ne.s32.totalorder %s1004_s13, %s732_s6  ;;  %p741_p2 = scmp.lt.s32.totalorder %s732_s6, %s732_s6 }
  0x63   : > { %p735_p4 = pnand %p733_p7, %p721_p6  ;;  %p742_p5 = por %p741_p2, %p740_p3 }
  0x65   : > { %p736_p1 = pneg %p735_p4 }
  0x67   : > { %p743_p12 = pnand %p742_p5, %p736_p1 }
  0x69   : > { %746 = shalt.err (!%p743_p12)
}
  0x6a   : > { %s842_s3 = smov 64   ;;  %s843_s9 = smov 4  }
  0x6b   : > { %588 = dma.hbm_to_vmem [thread:$0]  (!%p1151_p11), %s1132_s1, 256, %s1004_s13, [#allocation6], %s842_s3, %s842_s3, %s843_s9  }
  0x6c   : > { %p1152_p9 = scmp.ne.s32.totalorder %s1148_s11, 0 }
  0x6d   : > { %s261_s26 = sand.u32 (!%p1152_p9), 1, %s967_s30   ;;  %s263_s12 = sand.u32 (!%p1152_p9), 1, %s821_s16  }
  0x6e   : > { %259 = sbr.rel (%p1152_p9) target bundleno = 361 (0x169), region = 36  ;;  %s552_s0 = sshll.u32 (!%p1152_p9), %s263_s12, 3 }
  0x6f   : > { %s262_s7 = scalar_lea.sflag (!%p1152_p9), [#allocation3], %s261_s26  ;;  %s265_s14 = scalar_lea.vmem (!%p1152_p9), [#allocation2], %s552_s0 }
  0x70   : > { %p1153_p6 = scmp.ne.s32.totalorder (!%p1152_p9), %s1145_s10, 0 }
  0x75   : > { %800 = dma.done.wait (%p1153_p6), %s262_s7, 128  }
  0x76   : > { %802 = vsyncadd (%p1153_p6), %s262_s7, 4294967168  ;;  %p1154_p11 = scmp.eq.s32.totalorder %s967_s30, 0 }
  0x78   : > { %804 = dma.done.wait (%p1154_p11), [#allocation6], 256   ;;  %p1155_p8 = pmov %p1154_p11 }
  0x79   : > { %s278_s11 = scalar_lea.vmem [#allocation7], %s552_s0 }
  0x7a   : > { %806 = vsyncadd (%p1155_p8), [#allocation6], 4294967040 }
  0x7b   : > { %808 = dma.done.wait (%p1153_p6), %s262_s7, 128  }
  0x7c   : > { %810 = vsyncadd (%p1153_p6), %s262_s7, 4294967168  ;;  %v844_v0 = vmov 0.0   ;;  %vm845_vm0 = vmmov 0   ;;  %v657_v1 = vld [vmem:[#allocation5] sm:$0xff]   ;;  %v658_v2 = vld [vmem:[#allocation5 + $0x8] sm:$0xff]   ;;  %vm329_vm1 = vcmask 261120  }
  0x7d   : > { %567 = vmatprep.subr.bf16.mxu0 %v844_v0  ;;  %571 = vmatprep.mubr.msk.bf16.mxu0 %vm845_vm0, %v844_v0  ;;  %v332_v3 = vld [vmem:[%s265_s14] sm:$0xff]  ;;  %s310_s10 = scalar_lea.vmem [#allocation8], %s552_s0  ;;  %s561_s29 = sshll.u32 %s829_s18, 7 }
  0x7e   : > { %568 = vmatpush3.bf16.msra.mxu0 %v657_v1  ;;  %v320_v4 = vld [vmem:[%s278_s11] sm:$0xff]  ;;  %v333_v7 = vpack.c.bf16 %v332_v3, %v332_v3  ;;  %s411_s22 = sshll.u32 %s310_s10, 4  ;;  %s1081_s6 = scalar_lea.hbm %s1135_s4, %s561_s29  ;;  %s1083_s22 = int_to_ptr.vmem [resolvable:$true] %s411_s22 }
  0x7f   : > { %v556_v5 = vld [vmem:[%s1133_s2] ss:$0 sm:$0xff]  ;;  %569 = vmatprep.subr.bf16.mxu0 %v844_v0  ;;  %s397_s3 = scalar_lea.sflag [#allocation4], %s263_s12  ;;  %s747_s18 = scalar_lea.vmem %s1083_s22, 128 }
  0x80   : > { %v328_v6 = vadd.f32 %v556_v5, %v320_v4  ;;  %p748_p10 = scmp.ne.s32.totalorder %s1083_s22, %s747_s18  ;;  %p1156_p13 = scmp.ne.s32.totalorder %s1146_s5, 0 }
  0x81   : > { %s846_s9 = smov [#allocation8]  }
  0x82   : > { %330 = vst.msk [vmem:[%s310_s10] sm:$0xff] %vm329_vm1, %v328_v6  ;;  %570 = vmatpush3.bf16.msra.mxu0 %v658_v2  ;;  %p749_p0 = pnand %p748_p10, %p1156_p13  ;;  %s751_s23 = sshll.u32 %s846_s9, 4  ;;  %s752_s23 = int_to_ptr.vmem [resolvable:$false] %s751_s23 }
  0x83   : > { %s753_s25 = scalar_lea.vmem %s752_s23, 256  ;;  %p754_p4 = scmp.lt.s32.totalorder %s1083_s22, %s752_s23 }
  0x84   : > { %p750_p7 = pneg %p749_p0  ;;  %p755_p1 = scmp.lt.s32.totalorder %s753_s25, %s747_s18 }
  0x85   : > { %572 = vmatmul.mubr.msk.bf16.vlgmr.msra.gmra.mrb[0].mxu0 %vm329_vm1, %v333_v7 }
  0x86   : > { %p756_p3 = por %p755_p1, %p754_p4 }
  0x88   : > { %p757_p2 = pnand %p756_p3, %p750_p7 }
  0x89   : > { %v331_v8 = vld [vmem:[%s310_s10] sm:$0xff] }
 0x158   : > { %v388_v9 = vpop.f32.mrb[0].mxu0 }
 0x159   : > { %v394_v10 = vadd.f32 %v388_v9, %v331_v8  ;;  %v573_v11 = vpop.f32.mrb[1].mxu0 }
 0x15a   : > { %v391_v12 = vpop.f32.mrb[2].mxu0 }
 0x15b   : > { %395 = vst.msk [vmem:[%s310_s10] sm:$0xff] %vm329_vm1, %v394_v10  ;;  %v574_v13 = vpop.f32.mrb[3].mxu0 }
 0x15c   : > { %760 = shalt.err (!%p757_p2)
}
 0x15d   : > { %s761_s26 = scalar_lea.hbm %s1081_s6, 128  ;;  %s765_s7 = scalar_lea.hbm %s1135_s4, 256 }
 0x15e   : > { %p762_p5 = scmp.ne.s32.totalorder %s1081_s6, %s761_s26  ;;  %p766_p6 = scmp.lt.u32.totalorder %s1081_s6, %s1135_s4 }
 0x15f   : > { %p767_p11 = scmp.lt.u32.totalorder %s765_s7, %s761_s26  ;;  %p769_p10 = scmp.lt.u32.totalorder %s761_s26, %s1081_s6 }
 0x160   : > { %p763_p12 = pnand %p762_p5, %p1156_p13 }
 0x161   : > { %p768_p8 = por %p767_p11, %p766_p6 }
 0x162   : > { %p764_p9 = pneg %p763_p12 }
 0x163   : > { %p770_p0 = por %p769_p10, %p768_p8 }
 0x165   : > { %p771_p7 = pnand %p770_p0, %p764_p9 }
 0x167   : > { %774 = shalt.err (!%p771_p7)
}
 0x168   : > { %583 = dma.vmem_to_hbm [thread:$0]  (%p1156_p13), %s1083_s22, 128, %s1081_s6, %s397_s3  }
 0x169 PF: > { %s423_s13 = sand.u32 1, %s817_s15   ;;  %p1157_p4 = scmp.ne.s32.totalorder %s1147_s8, 0 }
 0x16a   : > { %p1158_p1 = scmp.ge.s32.totalorder %s837_s20, 2  ;;  %s424_s30 = scalar_lea.sflag [#allocation4], %s423_s13 }
 0x16c   : > { %p597_p3 = pnand %p1158_p1, %p1157_p4 }
 0x16e   : > { %812 = dma.done.wait (!%p597_p3), %s424_s30, 128  }
 0x16f   : > { %814 = vsyncadd (!%p597_p3), %s424_s30, 4294967168  ;;  %s21_s20 = sadd.s32 1, %s837_s20   ;;  %s1159_s15 = smov %s821_s16 }
 0x170   : > { %p18_p2 = scmp.ge.s32.totalorder %s21_s20, 4   ;;  %s1160_s16 = smov %s825_s17 }
 0x171   : > { %s1161_s17 = smov %s920_s27  ;;  %s1162_s18 = smov %s833_s19 }
 0x172   : > { %s1163_s19 = smov %s1165_s21  ;;  %20 = sbr.rel (!%p18_p2) target bundleno = 10 (0xa), region = 104 }
 0x179   :  { %429 = vsyncpa [#allocation3], 1 }
 0x17a   :  { %431 = vsyncpa [#allocation3 + $0x1], 1 }
 0x17b   :  { %432 = vsyncpa [#allocation6], 1 }
 0x17c   :  { %433 = vsyncpa [#allocation4], 1 }
 0x17d   :  { %435 = vsyncpa [#allocation4 + $0x1], 1 }

</bundles_post_ra>
